<compile_context>
chip_gen: v5e
topology: v5e:2x2
jax: 0.10.0
libtpu: 0.0.40
codegen_flags: <defaults>
</compile_context>

<pallas_src>
import functools

import jax
import jax.numpy as jnp
from jax import lax
from jax.experimental import pallas as pl
from jax.experimental.pallas import tpu as pltpu


def _pick_hw_tile(hw, c, max_block_bytes):
    """Largest multiple-of-128 divisor of `hw` whose (C, tile) f32 block fits
    `max_block_bytes`.  If divisors exist but none fit, returns the smallest
    one (never a full-HW block for large HW).  Returns None when `hw` has no
    multiple-of-128 divisor; the caller then uses the fused full-slab path."""
    divisors = [t for t in range(128, hw + 1, 128) if hw % t == 0]
    if not divisors:
        return None
    fitting = [t for t in divisors if t * c * 4 <= max_block_bytes]
    return max(fitting) if fitting else min(divisors)


def _adailn_fused_kernel(x_ref, rho_ref, gamma_ref, beta_ref, o_ref,
                         *, eps, hw, c):
    # Single pass over the per-batch slab: stats + normalize + affine while the
    # x tile is still resident in VMEM (read x once, write out once).
    x = x_ref[...].astype(jnp.float32)                      # (1, C, HW)
    s = jnp.sum(x, axis=2, keepdims=True)                   # (1, C, 1)
    sq = jnp.sum(x * x, axis=2, keepdims=True)
    # Instance stats per (n, c): unbiased variance (torch.var default).
    in_mean = s / hw
    in_var = jnp.maximum((sq - hw * in_mean * in_mean) / (hw - 1.0), 0.0)
    inv_in = lax.rsqrt(in_var + eps)
    # Layer stats per n, derived from the per-channel sums (one C reduce).
    n_ln = hw * c
    ln_mean = jnp.sum(s, axis=1, keepdims=True) / n_ln      # (1, 1, 1)
    ln_var = jnp.maximum(
        (jnp.sum(sq, axis=1, keepdims=True) - n_ln * ln_mean * ln_mean)
        / (n_ln - 1.0), 0.0)
    inv_ln = lax.rsqrt(ln_var + eps)
    rho = rho_ref[...]                                       # (1, C, 1)
    omr = 1.0 - rho
    g = gamma_ref[...]
    scale = g * (rho * inv_in + omr * inv_ln)
    shift = beta_ref[...] - g * (rho * in_mean * inv_in + omr * ln_mean * inv_ln)
    o_ref[...] = (x * scale + shift).astype(o_ref.dtype)


def _adailn_stats_kernel(x_ref, rho_ref, gamma_ref, beta_ref,
                         scale_ref, shift_ref, sum_sc, sq_sc,
                         *, eps, hw, c):
    j = pl.program_id(1)

    @pl.when(j == 0)
    def _():
        sum_sc[...] = jnp.zeros_like(sum_sc)
        sq_sc[...] = jnp.zeros_like(sq_sc)

    x = x_ref[...].astype(jnp.float32)                       # (1, C, tile_hw)
    sum_sc[...] += jnp.sum(x, axis=2, keepdims=True)          # (1, C, 1)
    sq_sc[...] += jnp.sum(x * x, axis=2, keepdims=True)

    @pl.when(j == pl.num_programs(1) - 1)
    def _():
        s = sum_sc[...]
        sq = sq_sc[...]
        in_mean = s / hw
        in_var = jnp.maximum((sq - hw * in_mean * in_mean) / (hw - 1.0), 0.0)
        inv_in = lax.rsqrt(in_var + eps)
        n_ln = hw * c
        ln_mean = jnp.sum(s, axis=1, keepdims=True) / n_ln
        ln_var = jnp.maximum(
            (jnp.sum(sq, axis=1, keepdims=True) - n_ln * ln_mean * ln_mean)
            / (n_ln - 1.0), 0.0)
        inv_ln = lax.rsqrt(ln_var + eps)
        rho = rho_ref[...]
        omr = 1.0 - rho
        g = gamma_ref[...]
        scale_ref[...] = g * (rho * inv_in + omr * inv_ln)
        shift_ref[...] = (beta_ref[...]
                          - g * (rho * in_mean * inv_in + omr * ln_mean * inv_ln))


def _adailn_apply_kernel(x_ref, scale_ref, shift_ref, o_ref):
    # Fused normalize + affine; scale/shift broadcast along lane-dense H*W.
    x = x_ref[...].astype(jnp.float32)
    o_ref[...] = (x * scale_ref[...] + shift_ref[...]).astype(o_ref.dtype)


def ada_iln(x_nchw, rho, gamma, beta, eps=1e-5, *,
            fused_vmem_budget=48 * 1024 * 1024,
            max_block_bytes=8 * 1024 * 1024):
    """adaILN forward.  x: [N,C,H,W] (any float dtype; output keeps it);
    rho: [1,C,1,1] (or [C]); gamma/beta: [N,C]."""
    N, C, H, W = x_nchw.shape
    HW = H * W
    dtype = x_nchw.dtype
    itemsize = dtype.itemsize
    x3 = x_nchw.reshape(N, C, HW)                            # view; no dtype cast
    rho3 = rho.reshape(1, C, 1).astype(jnp.float32)
    gamma3 = gamma.reshape(N, C, 1).astype(jnp.float32)
    beta3 = beta.reshape(N, C, 1).astype(jnp.float32)

    tile_hw = _pick_hw_tile(HW, C, max_block_bytes)

    # Fused footprint: double-buffered in + out native blocks plus ~2 f32 temps.
    fused_bytes = C * HW * (4 * itemsize + 2 * 4)
    use_fused = (tile_hw is None) or (fused_bytes <= fused_vmem_budget)

    if use_fused:
        vmem_limit = int(min(max(fused_bytes + (2 << 20), 32 << 20), 100 << 20))
        # TODO(synk): if the fused path is *forced* (HW has no multiple-of-128
        # divisor) and the slab is huge, this could exceed v7x's 64 MiB VMEM; a
        # masked-tail (pl.Element) tiling would be needed for that corner case.
        out = pl.pallas_call(
            functools.partial(_adailn_fused_kernel, eps=float(eps),
                              hw=float(HW), c=float(C)),
            out_shape=jax.ShapeDtypeStruct((N, C, HW), dtype),
            grid=(N,),
            in_specs=[pl.BlockSpec((1, C, HW), lambda n: (n, 0, 0)),
                      pl.BlockSpec((1, C, 1), lambda n: (0, 0, 0)),
                      pl.BlockSpec((1, C, 1), lambda n: (n, 0, 0)),
                      pl.BlockSpec((1, C, 1), lambda n: (n, 0, 0))],
            out_specs=pl.BlockSpec((1, C, HW), lambda n: (n, 0, 0)),
            compiler_params=pltpu.CompilerParams(
                dimension_semantics=("parallel",),
                vmem_limit_bytes=vmem_limit),
        )(x3, rho3, gamma3, beta3)
        return out.reshape(N, C, H, W)

    # ------------------ two-pass fallback (large feature maps) ------------------
    nj = HW // tile_hw
    block_native = C * tile_hw * itemsize
    block_f32 = C * tile_hw * 4
    vmem_limit = int(min(max(4 * block_native + 2 * block_f32 + (2 << 20),
                             32 << 20), 56 << 20))

    # Pass 1: per-(n, c) scale/shift from single-pass sum & sum-of-squares.
    scale, shift = pl.pallas_call(
        functools.partial(_adailn_stats_kernel, eps=float(eps),
                          hw=float(HW), c=float(C)),
        out_shape=(jax.ShapeDtypeStruct((N, C, 1), jnp.float32),
                   jax.ShapeDtypeStruct((N, C, 1), jnp.float32)),
        grid=(N, nj),
        in_specs=[pl.BlockSpec((1, C, tile_hw), lambda n, j: (n, 0, j)),
                  pl.BlockSpec((1, C, 1), lambda n, j: (0, 0, 0)),
                  pl.BlockSpec((1, C, 1), lambda n, j: (n, 0, 0)),
                  pl.BlockSpec((1, C, 1), lambda n, j: (n, 0, 0))],
        out_specs=(pl.BlockSpec((1, C, 1), lambda n, j: (n, 0, 0)),
                   pl.BlockSpec((1, C, 1), lambda n, j: (n, 0, 0))),
        scratch_shapes=[pltpu.VMEM((1, C, 1), jnp.float32),
                        pltpu.VMEM((1, C, 1), jnp.float32)],
        compiler_params=pltpu.CompilerParams(
            dimension_semantics=("parallel", "arbitrary"),
            vmem_limit_bytes=vmem_limit),
    )(x3, rho3, gamma3, beta3)

    # Pass 2: fused, fully parallel apply (one read + one write of the map).
    out = pl.pallas_call(
        _adailn_apply_kernel,
        out_shape=jax.ShapeDtypeStruct((N, C, HW), dtype),
        grid=(N, nj),
        in_specs=[pl.BlockSpec((1, C, tile_hw), lambda n, j: (n, 0, j)),
                  pl.BlockSpec((1, C, 1), lambda n, j: (n, 0, 0)),
                  pl.BlockSpec((1, C, 1), lambda n, j: (n, 0, 0))],
        out_specs=pl.BlockSpec((1, C, tile_hw), lambda n, j: (n, 0, j)),
        compiler_params=pltpu.CompilerParams(
            dimension_semantics=("parallel", "parallel"),
            vmem_limit_bytes=vmem_limit),
    )(x3, scale, shift)
    return out.reshape(N, C, H, W)


def ada_iln_reference(x, rho, gamma, beta, eps=1e-5):
    """Pure-JAX reference matching the PyTorch module (unbiased variance)."""
    in_mean = jnp.mean(x, axis=(2, 3), keepdims=True)
    in_var = jnp.var(x, axis=(2, 3), keepdims=True, ddof=1)
    out_in = (x - in_mean) / jnp.sqrt(in_var + eps)
    ln_mean = jnp.mean(x, axis=(1, 2, 3), keepdims=True)
    ln_var = jnp.var(x, axis=(1, 2, 3), keepdims=True, ddof=1)
    out_ln = (x - ln_mean) / jnp.sqrt(ln_var + eps)
    r = rho.reshape(1, x.shape[1], 1, 1)
    out = r * out_in + (1.0 - r) * out_ln
    return out * gamma[:, :, None, None] + beta[:, :, None, None]


if __name__ == "__main__":
    N, C, H, W = 2, 32, 16, 16
    k1, k2, k3 = jax.random.split(jax.random.PRNGKey(0), 3)
    x = jax.random.normal(k1, (N, C, H, W), jnp.float32)
    gamma = jax.random.normal(k2, (N, C), jnp.float32)
    beta = jax.random.normal(k3, (N, C), jnp.float32)
    rho = jnp.full((1, C, 1, 1), 0.9, jnp.float32)   # Parameter init in the module

    ref = ada_iln_reference(x, rho, gamma, beta)

    # 1) Default fused single-pass path (x read once, written once).
    out = jax.jit(ada_iln)(x, rho, gamma, beta)
    jax.block_until_ready(out)
    assert out.shape == (N, C, H, W) and out.dtype == x.dtype
    assert bool(jnp.allclose(out, ref, atol=1e-3, rtol=1e-3)), (
        "fused: max abs diff = %f" % float(jnp.max(jnp.abs(out - ref))))

    # 2) Forced two-pass fallback with tiny blocks: HW=256 -> two 128-lane
    #    tiles, exercising the multi-tile reduction / accumulator path.
    fwd_2pass = jax.jit(functools.partial(ada_iln, fused_vmem_budget=0,
                                          max_block_bytes=16 * 1024))
    out2 = fwd_2pass(x, rho, gamma, beta)
    jax.block_until_ready(out2)
    assert bool(jnp.allclose(out2, ref, atol=1e-3, rtol=1e-3)), (
        "2-pass: max abs diff = %f" % float(jnp.max(jnp.abs(out2 - ref))))

    # 3) bf16 input: DMA'd as bf16 (no wrapper upcast), stats in f32, bf16 out.
    x_bf = x.astype(jnp.bfloat16)
    out_bf = jax.jit(ada_iln)(x_bf, rho, gamma, beta)
    jax.block_until_ready(out_bf)
    assert out_bf.dtype == jnp.bfloat16
    ref_bf = ada_iln_reference(x_bf.astype(jnp.float32), rho, gamma, beta)
    assert bool(jnp.allclose(out_bf.astype(jnp.float32), ref_bf,
                             atol=0.2, rtol=0.1))

    print("KERNEL_OK")
</pallas_src>

<mosaic_0001>
module attributes {stable_mosaic.version = 11 : i64} {
  func.func @_adailn_fused_kernel(%arg0: i32, %arg1: memref<1x32x256xf32, #tpu.memory_space<vmem>>, %arg2: memref<1x32x1xf32, #tpu.memory_space<vmem>>, %arg3: memref<1x32x1xf32, #tpu.memory_space<vmem>>, %arg4: memref<1x32x1xf32, #tpu.memory_space<vmem>>, %arg5: memref<1x32x256xf32, #tpu.memory_space<vmem>>) attributes {dimension_semantics = [#tpu.dimension_semantics<parallel>], iteration_bounds = array<i64: 2>, scalar_prefetch = 0 : i64, scratch_operands = 0 : i64, tpu.core_type = #tpu.core_type<tc>, window_params = [{transform_indices = @transform_0, window_bounds = array<i64: 1, 32, 256>}, {pipeline_mode = #tpu.pipeline_mode<synchronous>, transform_indices = @transform_1, window_bounds = array<i64: 1, 32, 1>}, {transform_indices = @transform_2, window_bounds = array<i64: 1, 32, 1>}, {transform_indices = @transform_3, window_bounds = array<i64: 1, 32, 1>}, {transform_indices = @transform_4, window_bounds = array<i64: 1, 32, 256>}]} {
    %c0 = arith.constant 0 : index
    %c0_0 = arith.constant 0 : index
    %c0_1 = arith.constant 0 : index
    %0 = vector.load %arg1[%c0, %c0_0, %c0_1] : memref<1x32x256xf32, #tpu.memory_space<vmem>>, vector<1x32x256xf32>
    %cst = arith.constant dense<0.000000e+00> : vector<1x32xf32>
    %1 = vector.multi_reduction <add>, %0, %cst [2] : vector<1x32x256xf32> to vector<1x32xf32>
    %2 = vector.shape_cast %1 : vector<1x32xf32> to vector<1x32x1xf32>
    %3 = arith.mulf %0, %0 : vector<1x32x256xf32>
    %cst_2 = arith.constant dense<0.000000e+00> : vector<1x32xf32>
    %4 = vector.multi_reduction <add>, %3, %cst_2 [2] : vector<1x32x256xf32> to vector<1x32xf32>
    %5 = vector.shape_cast %4 : vector<1x32xf32> to vector<1x32x1xf32>
    %cst_3 = arith.constant 2.560000e+02 : f32
    %6 = vector.broadcast %cst_3 : f32 to vector<1x32x1xf32>
    %7 = arith.divf %2, %6 : vector<1x32x1xf32>
    %cst_4 = arith.constant 2.560000e+02 : f32
    %8 = vector.broadcast %cst_4 : f32 to vector<1x32x1xf32>
    %9 = arith.mulf %8, %7 : vector<1x32x1xf32>
    %10 = arith.mulf %9, %7 : vector<1x32x1xf32>
    %11 = arith.subf %5, %10 : vector<1x32x1xf32>
    %cst_5 = arith.constant 2.550000e+02 : f32
    %12 = vector.broadcast %cst_5 : f32 to vector<1x32x1xf32>
    %13 = arith.divf %11, %12 : vector<1x32x1xf32>
    %cst_6 = arith.constant 0.000000e+00 : f32
    %14 = vector.broadcast %cst_6 : f32 to vector<1x32x1xf32>
    %15 = arith.maximumf %13, %14 : vector<1x32x1xf32>
    %cst_7 = arith.constant 9.99999974E-6 : f32
    %16 = vector.broadcast %cst_7 : f32 to vector<1x32x1xf32>
    %17 = arith.addf %15, %16 : vector<1x32x1xf32>
    %18 = math.rsqrt %17 : vector<1x32x1xf32>
    %cst_8 = arith.constant dense<0.000000e+00> : vector<1x1xf32>
    %19 = vector.multi_reduction <add>, %2, %cst_8 [1] : vector<1x32x1xf32> to vector<1x1xf32>
    %20 = vector.shape_cast %19 : vector<1x1xf32> to vector<1x1x1xf32>
    %cst_9 = arith.constant 8.192000e+03 : f32
    %21 = vector.broadcast %cst_9 : f32 to vector<1x1x1xf32>
    %22 = arith.divf %20, %21 : vector<1x1x1xf32>
    %cst_10 = arith.constant dense<0.000000e+00> : vector<1x1xf32>
    %23 = vector.multi_reduction <add>, %5, %cst_10 [1] : vector<1x32x1xf32> to vector<1x1xf32>
    %24 = vector.shape_cast %23 : vector<1x1xf32> to vector<1x1x1xf32>
    %cst_11 = arith.constant 8.192000e+03 : f32
    %25 = vector.broadcast %cst_11 : f32 to vector<1x1x1xf32>
    %26 = arith.mulf %25, %22 : vector<1x1x1xf32>
    %27 = arith.mulf %26, %22 : vector<1x1x1xf32>
    %28 = arith.subf %24, %27 : vector<1x1x1xf32>
    %cst_12 = arith.constant 8.191000e+03 : f32
    %29 = vector.broadcast %cst_12 : f32 to vector<1x1x1xf32>
    %30 = arith.divf %28, %29 : vector<1x1x1xf32>
    %cst_13 = arith.constant 0.000000e+00 : f32
    %31 = vector.broadcast %cst_13 : f32 to vector<1x1x1xf32>
    %32 = arith.maximumf %30, %31 : vector<1x1x1xf32>
    %cst_14 = arith.constant 9.99999974E-6 : f32
    %33 = vector.broadcast %cst_14 : f32 to vector<1x1x1xf32>
    %34 = arith.addf %32, %33 : vector<1x1x1xf32>
    %35 = math.rsqrt %34 : vector<1x1x1xf32>
    %c0_15 = arith.constant 0 : index
    %c0_16 = arith.constant 0 : index
    %c0_17 = arith.constant 0 : index
    %36 = vector.load %arg2[%c0_15, %c0_16, %c0_17] : memref<1x32x1xf32, #tpu.memory_space<vmem>>, vector<1x32x1xf32>
    %cst_18 = arith.constant 1.000000e+00 : f32
    %37 = vector.broadcast %cst_18 : f32 to vector<1x32x1xf32>
    %38 = arith.subf %37, %36 : vector<1x32x1xf32>
    %c0_19 = arith.constant 0 : index
    %c0_20 = arith.constant 0 : index
    %c0_21 = arith.constant 0 : index
    %39 = vector.load %arg3[%c0_19, %c0_20, %c0_21] : memref<1x32x1xf32, #tpu.memory_space<vmem>>, vector<1x32x1xf32>
    %40 = arith.mulf %36, %18 : vector<1x32x1xf32>
    %41 = vector.broadcast %35 : vector<1x1x1xf32> to vector<1x32x1xf32>
    %42 = arith.mulf %38, %41 : vector<1x32x1xf32>
    %43 = arith.addf %40, %42 : vector<1x32x1xf32>
    %44 = arith.mulf %39, %43 : vector<1x32x1xf32>
    %c0_22 = arith.constant 0 : index
    %c0_23 = arith.constant 0 : index
    %c0_24 = arith.constant 0 : index
    %45 = vector.load %arg4[%c0_22, %c0_23, %c0_24] : memref<1x32x1xf32, #tpu.memory_space<vmem>>, vector<1x32x1xf32>
    %46 = arith.mulf %36, %7 : vector<1x32x1xf32>
    %47 = arith.mulf %46, %18 : vector<1x32x1xf32>
    %48 = vector.broadcast %22 : vector<1x1x1xf32> to vector<1x32x1xf32>
    %49 = arith.mulf %38, %48 : vector<1x32x1xf32>
    %50 = vector.broadcast %35 : vector<1x1x1xf32> to vector<1x32x1xf32>
    %51 = arith.mulf %49, %50 : vector<1x32x1xf32>
    %52 = arith.addf %47, %51 : vector<1x32x1xf32>
    %53 = arith.mulf %39, %52 : vector<1x32x1xf32>
    %54 = arith.subf %45, %53 : vector<1x32x1xf32>
    %55 = vector.broadcast %44 : vector<1x32x1xf32> to vector<1x32x256xf32>
    %56 = arith.mulf %0, %55 : vector<1x32x256xf32>
    %57 = vector.broadcast %54 : vector<1x32x1xf32> to vector<1x32x256xf32>
    %58 = arith.addf %56, %57 : vector<1x32x256xf32>
    %c0_25 = arith.constant 0 : index
    %c0_26 = arith.constant 0 : index
    %c0_27 = arith.constant 0 : index
    %59 = vector.load %arg5[%c0_25, %c0_26, %c0_27] : memref<1x32x256xf32, #tpu.memory_space<vmem>>, vector<1x32x256xf32>
    tpu.vector_store %arg5[%c0_25, %c0_26, %c0_27], %58 {strides = array<i32>} : memref<1x32x256xf32, #tpu.memory_space<vmem>>, vector<1x32x256xf32>,
    return
  }
  func.func @transform_0(%arg0: i32) -> (i32, i32, i32) {
    %c0_i32 = arith.constant 0 : i32
    %c0_i32_0 = arith.constant 0 : i32
    %c0_i32_1 = arith.constant 0 : i32
    return %arg0, %c0_i32, %c0_i32_0 : i32, i32, i32
  }
  func.func @transform_1(%arg0: i32) -> (i32, i32, i32) {
    %c0_i32 = arith.constant 0 : i32
    %c0_i32_0 = arith.constant 0 : i32
    %c0_i32_1 = arith.constant 0 : i32
    %c0_i32_2 = arith.constant 0 : i32
    return %c0_i32, %c0_i32_0, %c0_i32_1 : i32, i32, i32
  }
  func.func @transform_2(%arg0: i32) -> (i32, i32, i32) {
    %c0_i32 = arith.constant 0 : i32
    %c0_i32_0 = arith.constant 0 : i32
    %c0_i32_1 = arith.constant 0 : i32
    return %arg0, %c0_i32, %c0_i32_0 : i32, i32, i32
  }
  func.func @transform_3(%arg0: i32) -> (i32, i32, i32) {
    %c0_i32 = arith.constant 0 : i32
    %c0_i32_0 = arith.constant 0 : i32
    %c0_i32_1 = arith.constant 0 : i32
    return %arg0, %c0_i32, %c0_i32_0 : i32, i32, i32
  }
  func.func @transform_4(%arg0: i32) -> (i32, i32, i32) {
    %c0_i32 = arith.constant 0 : i32
    %c0_i32_0 = arith.constant 0 : i32
    %c0_i32_1 = arith.constant 0 : i32
    return %arg0, %c0_i32, %c0_i32_0 : i32, i32, i32
  }
}

</mosaic_0001>

<bundles_post_ra>
// kernel: ada_iln.1
= control target key start
LH: loop header
LB: loop body
LE: loop exit
PB: predicated region body
PF: predicated region fallthrough
CT: control target
= control target key end

     0   :  { %s703_s15 = smov 0   ;;  %s871_s0 = inlined_call_operand.vmem [shape: f32[2,32,256], index: 0, kind: input, shape index: {}]   ;;  %s872_s1 = inlined_call_operand.vmem [shape: f32[1,32,1], index: 1, kind: input, shape index: {}]   ;;  %s873_s2 = inlined_call_operand.vmem [shape: f32[2,32,1], index: 2, kind: input, shape index: {}]   ;;  %s874_s3 = inlined_call_operand.vmem [shape: f32[2,32,1], index: 3, kind: input, shape index: {}]   ;;  %s875_s4 = inlined_call_operand.vmem [shape: f32[2,32,256], index: 4, kind: output, shape index: {}]  }
   0x1 LB: > { %s612_s16 = sadd.s32 4294967295, %s671_s15   ;;  %p616_p0 = scmp.ge.s32.totalorder %s671_s15, 1  ;;  %s671_s15 = sphi %s703_s15, %s14_s15  }
   0x2   : > { %p182_p1 = scmp.lt.s32.totalorder %s671_s15, 3 }
   0x4   : > { %p183_p2 = pnand %p616_p0, %p182_p1 }
   0x5   : > { %p218_p3 = scmp.lt.s32.totalorder (!%p183_p2), %s612_s16, 1 }
   0x6   : > { %186 = sbr.rel (%p183_p2) target bundleno = 334 (0x14e), region = 36 }
   0xb   : > { %s877_s16 = smov (!%p218_p3, %s612_s16), 1  ;;  %v673_v24 = vmov 256.0   ;;  %v674_v28 = vmov 255.0   ;;  %v675_v36 = vmov 8192.0   ;;  %v676_v47 = vmov 8191.0  }
   0xc   : > { %s627_s17 = sshll.u32 %s877_s16, 6  ;;  %647 = vrcp.f32 %v673_v24  ;;  %s628_s23 = sshll.u32 %s877_s16, 5 }
   0xd   : > { %s222_s20 = scalar_lea.vmem %s871_s0, %s627_s17  ;;  %649 = vrcp.f32 %v674_v28  ;;  %s820_s30 = scalar_lea.vmem %s873_s2, %s628_s23 }
   0xe   : > { %v719_v0 = vld [vmem:[%s222_s20 + $0x20] sm:$0xff]  ;;  %v721_v1 = vld [vmem:[%s222_s20 + $0x28] sm:$0xff]  ;;  %v735_v8 = vld [vmem:[%s222_s20 + $0x10] sm:$0xff]  ;;  %651 = vrcp.f32 %v675_v36  ;;  %s842_s9 = scalar_lea.vmem %s874_s3, %s628_s23  ;;  %s237_s12 = scalar_lea.vmem %s875_s4, %s627_s17 }
   0xf   : > { %v723_v2 = vld [vmem:[%s222_s20] sm:$0xff]  ;;  %v252_v3 = vadd.f32 %v721_v1, %v719_v0  ;;  %v727_v4 = vld [vmem:[%s222_s20 + $0x8] sm:$0xff]  ;;  %v737_v9 = vld [vmem:[%s222_s20 + $0x18] sm:$0xff]  ;;  %v260_v13 = vmul.f32 %v735_v8, %v735_v8  ;;  %v262_v20 = vmul.f32 %v719_v0, %v719_v0  ;;  %v263_v21 = vmul.f32 %v721_v1, %v721_v1 }
  0x10   : > { %v258_v5 = vmul.f32 %v723_v2, %v723_v2  ;;  %v246_v6 = vadd.f32 %v727_v4, %v723_v2  ;;  %v259_v7 = vmul.f32 %v727_v4, %v727_v4  ;;  %v739_v11 = vld [vmem:[%s222_s20 + $0x30] sm:$0xff]  ;;  %v741_v12 = vld [vmem:[%s222_s20 + $0x38] sm:$0xff]  ;;  %v261_v14 = vmul.f32 %v737_v9, %v737_v9 }
  0x11   : > { %253 = vadd.xlane.f32.xlu1 %v252_v3  ;;  %v255_v15 = vadd.f32 %v741_v12, %v739_v11  ;;  %v249_v16 = vadd.f32 %v737_v9, %v735_v8  ;;  %v264_v18 = vmul.f32 %v739_v11, %v739_v11  ;;  %v265_v19 = vmul.f32 %v741_v12, %v741_v12 }
  0x12   : > { %247 = vadd.xlane.f32.xlu0 %v246_v6  ;;  %v266_v10 = vadd.f32 %v259_v7, %v258_v5  ;;  %v269_v17 = vadd.f32 %v261_v14, %v260_v13  ;;  %v272_v23 = vadd.f32 %v263_v21, %v262_v20  ;;  %v648_v25 = vpop.eup %647  ;;  %653 = vrcp.f32 %v676_v47 }
  0x13   : > { %v275_v22 = vadd.f32 %v265_v19, %v264_v18  ;;  %v279_v26 = vmul.f32 256.0, %v648_v25  ;;  %v650_v30 = vpop.eup %649  ;;  %vm283_vm0 = vweird.f32 %v648_v25 }
  0x14   : > { %267 = vadd.xlane.f32.xlu2 %v266_v10  ;;  %v302_v32 = vmul.f32 255.0, %v650_v30  ;;  %v652_v42 = vpop.eup %651  ;;  %vm306_vm1 = vweird.f32 %v650_v30 }
  0x15   : > { %v280_v27 = vsub.f32 1.0, %v279_v26  ;;  %v370_v49 = vmul.f32 8192.0, %v652_v42  ;;  %vm374_vm2 = vweird.f32 %v652_v42 }
  0x16   : > { %v303_v35 = vsub.f32 1.0, %v302_v32 }
  0x17   : > { %v281_v29 = vmul.f32 %v648_v25, %v280_v27  ;;  %v371_v58 = vsub.f32 1.0, %v370_v49 }
  0x18   : > { %v304_v40 = vmul.f32 %v650_v30, %v303_v35  ;;  %v654_v61 = vpop.eup %653 }
  0x19   : > { %256 = vadd.xlane.f32.xlu1 %v255_v15  ;;  %v282_v31 = vadd.f32 %v648_v25, %v281_v29  ;;  %v372_v14 = vmul.f32 %v652_v42, %v371_v58  ;;  %vm394_vm3 = vweird.f32 %v654_v61 }
  0x1a   : > { %250 = vadd.xlane.f32.xlu0 %v249_v16  ;;  %v305_v45 = vadd.f32 %v650_v30, %v304_v40  ;;  %v390_v16 = vmul.f32 8191.0, %v654_v61 }
  0x1b   : > { %v284_v33 = vsel %vm283_vm0, %v648_v25, %v282_v31  ;;  %v373_v28 = vadd.f32 %v652_v42, %v372_v14 }
  0x1c   : > { %270 = vadd.xlane.f32.xlu2 %v269_v17  ;;  %v307_v54 = vsel %vm306_vm1, %v650_v30, %v305_v45  ;;  %v391_v30 = vsub.f32 1.0, %v390_v16 }
  0x21   : > { %276 = vadd.xlane.f32.xlu1 %v275_v22 }
  0x22   : > { %273 = vadd.xlane.f32.xlu0 %v272_v23 }
  0x84   : > { %v254_v34 = vpop.xlane.xlu1 %253 }
  0x85   : > { %v248_v37 = vpop.xlane.xlu0 %247  ;;  %v763_v44 = vmul.f32 %v284_v33, %v254_v34 }
  0x86   : > { %v759_v38 = vmul.f32 %v284_v33, %v248_v37 }
  0x87   : > { %v268_v39 = vpop.xlane.xlu2 %267  ;;  %v291_v57 = vmul.f32 256.0, %v763_v44 }
  0x88   : > { %v289_v41 = vmul.f32 256.0, %v759_v38 }
  0x89   : > { %v295_v13 = vmul.f32 %v291_v57, %v763_v44 }
  0x8a   : > { %v293_v43 = vmul.f32 %v289_v41, %v759_v38 }
  0x8c   : > { %v257_v46 = vpop.xlane.xlu1 %256  ;;  %v297_v53 = vsub.f32 %v268_v39, %v293_v43  ;;  %v392_v43 = vmul.f32 %v654_v61, %v391_v30  ;;  %v410_v30 = vld [vmem:[%s872_s1 + $0x8] sm:$0xff] }
  0x8d   : > { %v765_v48 = vmul.f32 %v284_v33, %v257_v46  ;;  %v251_v50 = vpop.xlane.xlu0 %250 }
  0x8e   : > { %v767_v51 = vmul.f32 %v284_v33, %v251_v50  ;;  %v360_v52 = vadd.f32 %v251_v50, %v248_v37  ;;  %v308_v3 = vmul.f32 %v307_v54, %v297_v53  ;;  %v375_v37 = vsel %vm374_vm2, %v652_v42, %v373_v28 }
  0x8f   : > { %v271_v59 = vpop.xlane.xlu2 %270  ;;  %v292_v60 = vmul.f32 256.0, %v765_v48  ;;  %v677_v50 = vmov 0  }
  0x90   : > { %v361_v55 = vadd.f32 %v360_v52, %v254_v34  ;;  %v290_v56 = vmul.f32 256.0, %v767_v51  ;;  %v377_v7 = vadd.f32 %v271_v59, %v268_v39  ;;  %v312_v22 = vmax.f32 %v308_v3, 0.0  ;;  %646 = vset.pattern.permute.xlu1 %v677_v50  ;;  %645 = vset.pattern.permute.xlu0 %v677_v50 }
  0x91   : > { %v296_v15 = vmul.f32 %v292_v60, %v765_v48  ;;  %v393_v52 = vadd.f32 %v654_v61, %v392_v43  ;;  %644 = vset.pattern.permute.xlu2 %v677_v50 }
  0x92   : > { %v362_v62 = vadd.f32 %v361_v55, %v257_v46  ;;  %v294_v63 = vmul.f32 %v290_v56, %v767_v51  ;;  %v775_v33 = vadd.f32 1e-05, %v312_v22 }
  0x94   : > { %v363_v5 = vrot.slane %v362_v62, 4  ;;  %v298_v6 = vsub.f32 %v271_v59, %v294_v63  ;;  %v277_v10 = vpop.xlane.xlu1 %276  ;;  %655 = vrsqrt.f32 %v775_v33  ;;  %v395_v59 = vsel %vm394_vm3, %v654_v61, %v393_v52 }
  0x95   : > { %v274_v17 = vpop.xlane.xlu0 %273  ;;  %v300_v23 = vsub.f32 %v277_v10, %v296_v15  ;;  %vm326_vm6 = vweird.f32 %v775_v33 }
  0x96   : > { %v364_v18 = vadd.f32 %v363_v5, %v362_v62  ;;  %v309_v19 = vmul.f32 %v307_v54, %v298_v6  ;;  %v299_v20 = vsub.f32 %v274_v17, %v295_v13  ;;  %v378_v21 = vadd.f32 %v377_v7, %v274_v17 }
  0x97   : > { %v311_v34 = vmul.f32 %v307_v54, %v300_v23 }
  0x98   : > { %v365_v24 = vrot.slane %v364_v18, 2  ;;  %v313_v25 = vmax.f32 %v309_v19, 0.0  ;;  %v310_v26 = vmul.f32 %v307_v54, %v299_v20  ;;  %v379_v27 = vadd.f32 %v378_v21, %v277_v10 }
  0x99   : > { %v315_v45 = vmax.f32 %v311_v34, 0.0  ;;  %v414_v34 = vsub.f32 1.0, %v410_v30 }
  0x9a   : > { %v366_v29 = vadd.f32 %v365_v24, %v364_v18  ;;  %v314_v31 = vmax.f32 %v310_v26, 0.0  ;;  %v380_v32 = vrot.slane %v379_v27, 4  ;;  %v777_v36 = vadd.f32 1e-05, %v313_v25  ;;  %v656_v56 = vpop.eup %655 }
  0x9b   : > { %v787_v53 = vadd.f32 1e-05, %v315_v45  ;;  %v321_v63 = vmul.f32 %v656_v56, %v775_v33  ;;  %vm327_vm4 = vweird.f32 %v656_v56 }
  0x9c   : > { %v367_v35 = vrot.slane %v366_v29, 1  ;;  %v779_v39 = vadd.f32 1e-05, %v314_v31  ;;  %v381_v40 = vadd.f32 %v380_v32, %v379_v27  ;;  %657 = vrsqrt.f32 %v777_v36  ;;  %vm328_vm8 = vmor %vm326_vm6, %vm327_vm4 }
  0x9d   : > { %v322_v13 = vmul.f32 %v656_v56, %v321_v63  ;;  %vm336_vm9 = vweird.f32 %v777_v36  ;;  %vm356_vm1 = vweird.f32 %v787_v53  ;;  %v417_v63 = vld [vmem:[%s820_s30] sm:$0xff] }
  0x9e   : > { %v368_v41 = vadd.f32 %v367_v35, %v366_v29  ;;  %v382_v46 = vrot.slane %v381_v40, 2  ;;  %659 = vrsqrt.f32 %v779_v39  ;;  %vm346_vm11 = vweird.f32 %v779_v39 }
  0x9f   : > { %661 = vrsqrt.f32 %v787_v53  ;;  %v323_v17 = vmul.f32 0.5, %v322_v13 }
  0xa0   : > { %v782_v47 = vmul.f32 %v375_v37, %v368_v41  ;;  %v383_v49 = vadd.f32 %v382_v46, %v381_v40  ;;  %v411_v41 = vld [vmem:[%s872_s1 + $0x10] sm:$0xff] }
  0xa1   : > { %v324_v22 = vsub.f32 1.5, %v323_v17  ;;  %v415_v46 = vsub.f32 1.0, %v411_v41 }
  0xa2   : > { %v386_v42 = vmul.f32 8192.0, %v782_v47  ;;  %v384_v54 = vrot.slane %v383_v49, 1  ;;  %v658_v58 = vpop.eup %657 }
  0xa3   : > { %v331_v3 = vmul.f32 %v658_v58, %v777_v36  ;;  %vm337_vm5 = vweird.f32 %v658_v58  ;;  %v325_v29 = vmul.f32 %v656_v56, %v324_v22  ;;  %v409_v36 = vld [vmem:[%s872_s1] sm:$0xff] }
  0xa4   : > { %v387_v55 = vmul.f32 %v386_v42, %v782_v47  ;;  %v385_v57 = vadd.f32 %v384_v54, %v383_v49  ;;  %v660_v60 = vpop.eup %659  ;;  %vm338_vm10 = vmor %vm336_vm9, %vm337_vm5  ;;  %v450_v49 = vmul.f32 %v414_v34, %v782_v47 }
  0xa5   : > { %v341_v6 = vmul.f32 %v660_v60, %v779_v39  ;;  %v794_v10 = vpop.eup %661  ;;  %v332_v14 = vmul.f32 %v658_v58, %v331_v3  ;;  %vm347_vm7 = vweird.f32 %v660_v60  ;;  %v329_v40 = vsel %vm328_vm8, %v656_v56, %v325_v29  ;;  %v419_v3 = vld [vmem:[%s820_s30 + $0x10] sm:$0xff] }
  0xa6   : > { %v388_v62 = vsub.f32 %v385_v57, %v387_v55  ;;  %v351_v61 = vmul.f32 %v794_v10, %v787_v53  ;;  %vm348_vm13 = vmor %vm346_vm11, %vm347_vm7  ;;  %vm357_vm15 = vweird.f32 %v794_v10  ;;  %v413_v39 = vsub.f32 1.0, %v409_v36  ;;  %v412_v55 = vld [vmem:[%s872_s1 + $0x18] sm:$0xff] }
  0xa7   : > { %v342_v16 = vmul.f32 %v660_v60, %v341_v6  ;;  %v333_v18 = vmul.f32 0.5, %v332_v14  ;;  %v421_v52 = vmul.f32 %v409_v36, %v329_v40  ;;  %vm358_vm2 = vmor %vm356_vm1, %vm357_vm15  ;;  %v416_v14 = vsub.f32 1.0, %v412_v55 }
  0xa8   : > { %v396_v5 = vmul.f32 %v395_v59, %v388_v62  ;;  %v352_v20 = vmul.f32 %v794_v10, %v351_v61  ;;  %v418_v62 = vld [vmem:[%s820_s30 + $0x8] sm:$0xff] }
  0xa9   : > { %v343_v19 = vmul.f32 0.5, %v342_v16  ;;  %v334_v23 = vsub.f32 1.5, %v333_v18 }
  0xaa   : > { %v397_v7 = vmax.f32 %v396_v5, 0.0  ;;  %v353_v26 = vmul.f32 0.5, %v352_v20  ;;  %v449_v20 = vmul.f32 %v413_v39, %v782_v47 }
  0xab   : > { %v344_v24 = vsub.f32 1.5, %v343_v19  ;;  %v335_v28 = vmul.f32 %v658_v58, %v334_v23 }
  0xac   : > { %v398_v15 = vadd.f32 1e-05, %v397_v7  ;;  %v354_v35 = vsub.f32 1.5, %v353_v26 }
  0xad   : > { %v345_v32 = vmul.f32 %v660_v60, %v344_v24  ;;  %v339_v33 = vsel %vm338_vm10, %v658_v58, %v335_v28  ;;  %v444_v24 = vmul.f32 %v412_v55, %v765_v48  ;;  %v438_v28 = vld [vmem:[%s842_s9 + $0x8] sm:$0xff] }
  0xae   : > { %663 = vrsqrt.f32 %v398_v15  ;;  %vm405_vm14 = vweird.f32 %v398_v15  ;;  %v422_v42 = vmul.f32 %v410_v30, %v339_v33  ;;  %v355_v54 = vmul.f32 %v794_v10, %v354_v35 }
  0xaf   : > { %v812_v45 = vsel %vm348_vm13, %v660_v60, %v345_v32  ;;  %v442_v60 = vmul.f32 %v410_v30, %v767_v51 }
  0xb0   : > { %v423_v58 = vmul.f32 %v411_v41, %v812_v45 }
  0xb1   : > { %v446_v16 = vmul.f32 %v442_v60, %v339_v33 }
  0xb4   : > { %v664_v21 = vpop.eup %663 }
  0xb5   : > { %v400_v25 = vmul.f32 %v664_v21, %v398_v15  ;;  %vm406_vm12 = vweird.f32 %v664_v21  ;;  %v359_v15 = vsel %vm358_vm2, %v794_v10, %v355_v54  ;;  %v452_v10 = vmul.f32 %v416_v14, %v782_v47 }
  0xb6   : > { %vm407_vm0 = vmor %vm405_vm14, %vm406_vm12  ;;  %v424_v19 = vmul.f32 %v412_v55, %v359_v15  ;;  %v448_v30 = vmul.f32 %v444_v24, %v359_v15  ;;  %v439_v55 = vld [vmem:[%s842_s9 + $0x10] sm:$0xff] }
  0xb7   : > { %v401_v27 = vmul.f32 %v664_v21, %v400_v25  ;;  %v420_v25 = vld [vmem:[%s820_s30 + $0x18] sm:$0xff] }
  0xb9   : > { %v402_v31 = vmul.f32 0.5, %v401_v27 }
  0xbb   : > { %v403_v37 = vsub.f32 1.5, %v402_v31 }
  0xbd   : > { %v404_v43 = vmul.f32 %v664_v21, %v403_v37  ;;  %v443_v37 = vmul.f32 %v411_v41, %v763_v44 }
  0xbf   : > { %v408_v50 = vsel %vm407_vm0, %v664_v21, %v404_v43  ;;  %v441_v21 = vmul.f32 %v409_v36, %v759_v38  ;;  %v451_v38 = vmul.f32 %v415_v46, %v782_v47  ;;  %v437_v36 = vld [vmem:[%s842_s9] sm:$0xff] }
  0xc0   : > { %v426_v56 = vmul.f32 %v414_v34, %v408_v50  ;;  %v425_v57 = vmul.f32 %v413_v39, %v408_v50  ;;  %v427_v59 = vmul.f32 %v415_v46, %v408_v50  ;;  %v454_v5 = vmul.f32 %v450_v49, %v408_v50  ;;  %v440_v39 = vld [vmem:[%s842_s9 + $0x18] sm:$0xff] }
  0xc1   : > { %v428_v53 = vmul.f32 %v416_v14, %v408_v50  ;;  %v453_v23 = vmul.f32 %v449_v20, %v408_v50  ;;  %v456_v27 = vmul.f32 %v452_v10, %v408_v50  ;;  %v445_v29 = vmul.f32 %v441_v21, %v329_v40 }
  0xc2   : > { %v430_v6 = vadd.f32 %v426_v56, %v422_v42  ;;  %v429_v7 = vadd.f32 %v425_v57, %v421_v52  ;;  %v431_v13 = vadd.f32 %v427_v59, %v423_v58  ;;  %v458_v18 = vadd.f32 %v454_v5, %v446_v16 }
  0xc3   : > { %v432_v22 = vadd.f32 %v428_v53, %v424_v19  ;;  %v457_v32 = vadd.f32 %v453_v23, %v445_v29  ;;  %v460_v35 = vadd.f32 %v456_v27, %v448_v30  ;;  %v455_v33 = vmul.f32 %v451_v38, %v408_v50 }
  0xc4   : > { %v434_v61 = vmul.f32 %v430_v6, %v418_v62  ;;  %v433_v51 = vmul.f32 %v429_v7, %v417_v63  ;;  %v435_v17 = vmul.f32 %v431_v13, %v419_v3  ;;  %v462_v26 = vmul.f32 %v458_v18, %v418_v62 }
  0xc5   : > { %v436_v31 = vmul.f32 %v432_v22, %v420_v25  ;;  %v461_v48 = vmul.f32 %v457_v32, %v417_v63  ;;  %v464_v43 = vmul.f32 %v460_v35, %v420_v25  ;;  %v447_v40 = vmul.f32 %v443_v37, %v812_v45 }
  0xc6   : > { %476 = vperm.xlu0 %645, %v434_v61   ;;  %471 = vperm.xlu2 %644, %v433_v51   ;;  %v466_v34 = vsub.f32 %v438_v28, %v462_v26 }
  0xc7   : > { %481 = vperm.xlu1 %646, %v435_v17   ;;  %v465_v49 = vsub.f32 %v437_v36, %v461_v48  ;;  %v459_v42 = vadd.f32 %v455_v33, %v447_v40  ;;  %v468_v52 = vsub.f32 %v440_v39, %v464_v43 }
  0xc9   : > { %v463_v54 = vmul.f32 %v459_v42, %v419_v3 }
  0xcb   : > { %v467_v56 = vsub.f32 %v439_v55, %v463_v54 }
  0xce   : > { %486 = vperm.xlu2 %644, %v436_v31  }
  0xcf   : > { %504 = vperm.xlu1 %646, %v466_v34  }
  0xd6   : > { %499 = vperm.xlu2 %644, %v465_v49  }
  0xd7   : > { %514 = vperm.xlu1 %646, %v468_v52  }
  0xde   : > { %509 = vperm.xlu2 %644, %v467_v56  }
 0x120   : > { %v472_v47 = vpop.permute.xlu2 %471 }
 0x121   : > { %v489_v44 = vmul.f32 %v472_v47, %v723_v2  ;;  %v490_v41 = vmul.f32 %v472_v47, %v727_v4 }
 0x128   : > { %v487_v46 = vpop.permute.xlu2 %486 }
 0x129   : > { %v495_v14 = vmul.f32 %v487_v46, %v739_v11 }
 0x130   : > { %v500_v45 = vpop.permute.xlu2 %499 }
 0x131   : > { %v517_v50 = vadd.f32 %v500_v45, %v489_v44  ;;  %v518_v57 = vadd.f32 %v500_v45, %v490_v41 }
 0x133   : > { %525 = vst [vmem:[%s237_s12] sm:$0xff] %v517_v50 }
 0x134   : > { %526 = vst [vmem:[%s237_s12 + $0x8] sm:$0xff] %v518_v57 }
 0x138   : > { %v510_v62 = vpop.permute.xlu2 %509  ;;  %v477_v3 = vpop.permute.xlu0 %476 }
 0x139   : > { %v482_v58 = vpop.permute.xlu1 %481  ;;  %v491_v4 = vmul.f32 %v477_v3, %v735_v8  ;;  %v492_v5 = vmul.f32 %v477_v3, %v737_v9 }
 0x13a   : > { %v493_v59 = vmul.f32 %v482_v58, %v719_v0  ;;  %v494_v60 = vmul.f32 %v482_v58, %v721_v1  ;;  %v496_v0 = vmul.f32 %v487_v46, %v741_v12 }
 0x13c   : > { %v521_v63 = vadd.f32 %v510_v62, %v493_v59  ;;  %v522_v2 = vadd.f32 %v510_v62, %v494_v60 }
 0x13e   : > { %529 = vst [vmem:[%s237_s12 + $0x20] sm:$0xff] %v521_v63 }
 0x13f   : > { %530 = vst [vmem:[%s237_s12 + $0x28] sm:$0xff] %v522_v2 }
 0x141   : > { %v505_v6 = vpop.permute.xlu1 %504 }
 0x142   : > { %v519_v7 = vadd.f32 %v505_v6, %v491_v4  ;;  %v520_v13 = vadd.f32 %v505_v6, %v492_v5 }
 0x144   : > { %527 = vst [vmem:[%s237_s12 + $0x10] sm:$0xff] %v519_v7 }
 0x145   : > { %528 = vst [vmem:[%s237_s12 + $0x18] sm:$0xff] %v520_v13 }
 0x149   : > { %v515_v1 = vpop.permute.xlu1 %514 }
 0x14a   : > { %v523_v15 = vadd.f32 %v515_v1, %v495_v14  ;;  %v524_v16 = vadd.f32 %v515_v1, %v496_v0 }
 0x14c   : > { %531 = vst [vmem:[%s237_s12 + $0x30] sm:$0xff] %v523_v15 }
 0x14d   : > { %532 = vst [vmem:[%s237_s12 + $0x38] sm:$0xff] %v524_v16 }
 0x14e PF: > { %s14_s15 = sadd.s32 1, %s671_s15  }
 0x14f   : > { %p11_p4 = scmp.ge.s32.totalorder %s14_s15, 4  }
 0x151   :  { %13 = sbr.rel (!%p11_p4) target bundleno = 1 (0x1), region = 72 }

</bundles_post_ra>
